<compile_context>
chip_gen: v5e
topology: v5e:2x2
jax: 0.10.0
libtpu: 0.0.40
codegen_flags: <defaults>
</compile_context>

<pallas_src>
import functools
import math

import jax
import jax.numpy as jnp
from jax.experimental import pallas as pl
from jax.experimental.pallas import tpu as pltpu


def _layer_norm(x, gamma, beta, eps=1e-5):
    mean = jnp.mean(x, axis=-1, keepdims=True)
    var = jnp.mean((x - mean) ** 2, axis=-1, keepdims=True)
    return (x - mean) * jax.lax.rsqrt(var + eps) * gamma + beta


# --------------------------------------------------------------------------------------
# Kernel 1: fused QKV projection -> head-major q/k/v (bf16 writeback)
# --------------------------------------------------------------------------------------
def qkv_proj_kernel(x_ref, wqkv_ref, bqkv_ref, q_ref, k_ref, v_ref, *, n_heads):
    d_model = x_ref.shape[-1]
    d_k = d_model // n_heads
    ts = x_ref.shape[1]

    x = x_ref[0].astype(wqkv_ref.dtype)                       # (Ts, D) -> bf16 operand
    qkv = jnp.dot(x, wqkv_ref[...],
                  preferred_element_type=jnp.float32) + bqkv_ref[0]   # (Ts, 3D) f32
    qkv = qkv.astype(q_ref.dtype)                             # bf16 writeback

    def heads(t):                                             # (Ts, D) -> (H, Ts, dk)
        return jnp.transpose(t.reshape(ts, n_heads, d_k), (1, 0, 2))

    q_ref[0] = heads(qkv[:, :d_model])
    k_ref[0] = heads(qkv[:, d_model:2 * d_model])
    v_ref[0] = heads(qkv[:, 2 * d_model:])


# --------------------------------------------------------------------------------------
# Kernel 2: flash attention (online softmax) + out-proj + residual/LN1 + FFN + residual/LN2
# --------------------------------------------------------------------------------------
def attn_ffn_kernel(x_ref, q_ref, k_ref, v_ref,
                    wo_ref, bo_ref, w1_ref, b1_ref, w2_ref, b2_ref,
                    g1_ref, be1_ref, g2_ref, be2_ref,
                    out_ref,
                    m_scr, l_scr, acc_scr,
                    *, n_heads):
    ki = pl.program_id(2)
    nk = pl.num_programs(2)

    d_model = x_ref.shape[-1]
    d_k = q_ref.shape[-1]
    scale = 1.0 / math.sqrt(d_k)

    @pl.when(ki == 0)
    def _():
        m_scr[...] = jnp.full(m_scr.shape, -jnp.inf, m_scr.dtype)
        l_scr[...] = jnp.zeros(l_scr.shape, l_scr.dtype)
        acc_scr[...] = jnp.zeros(acc_scr.shape, acc_scr.dtype)

    qh = q_ref[0]                                             # (H, Tq, dk) bf16
    kh = k_ref[0]                                             # (H, Tkv, dk) bf16
    vh = v_ref[0]                                             # (H, Tkv, dk) bf16

    # scores / online softmax statistics in f32
    s = jnp.einsum("hqd,hkd->hqk", qh, kh,
                   preferred_element_type=jnp.float32) * scale        # (H, Tq, Tkv)
    m_prev = m_scr[...]
    m_new = jnp.maximum(m_prev, jnp.max(s, axis=-1, keepdims=True))
    alpha = jnp.exp(m_prev - m_new)
    p = jnp.exp(s - m_new)
    l_scr[...] = alpha * l_scr[...] + jnp.sum(p, axis=-1, keepdims=True)
    acc_scr[...] = alpha * acc_scr[...] + jnp.einsum(
        "hqk,hkd->hqd", p.astype(vh.dtype), vh,
        preferred_element_type=jnp.float32)                            # (H, Tq, dk)
    m_scr[...] = m_new

    @pl.when(ki == nk - 1)
    def _():
        inv_l = pl.reciprocal(l_scr[...], approx=True)
        ctx = acc_scr[...] * inv_l                                     # (H, Tq, dk) f32
        tq = ctx.shape[1]
        # merge heads with a single transpose+reshape (no per-head concat)
        attn = jnp.transpose(ctx, (1, 0, 2)).reshape(tq, d_model)      # (Tq, D)

        mm = wo_ref.dtype                                              # bf16 MXU operands
        o = jnp.dot(attn.astype(mm), wo_ref[...],
                    preferred_element_type=jnp.float32) + bo_ref[0]

        x = x_ref[0]                                                   # (Tq, D) f32
        y = _layer_norm(x + o, g1_ref[0], be1_ref[0])

        h1 = jnp.maximum(
            jnp.dot(y.astype(mm), w1_ref[...],
                    preferred_element_type=jnp.float32) + b1_ref[0], 0.0)
        # TODO(synk): dropout treated as identity (eval mode)
        ff = jnp.dot(h1.astype(mm), w2_ref[...],
                     preferred_element_type=jnp.float32) + b2_ref[0]

        out_ref[0] = _layer_norm(y + ff, g2_ref[0], be2_ref[0]).astype(out_ref.dtype)


# --------------------------------------------------------------------------------------
# Wrapper
# --------------------------------------------------------------------------------------
def _vmem_limit_bytes():
    """Generation-aware VMEM budget (leave headroom for compiler scratch)."""
    cap = 64 * 1024 * 1024          # conservative fallback (v7x-sized part)
    try:
        info = pltpu.get_tpu_info()
        cap = int(getattr(info, "vmem_capacity_bytes", cap) or cap)
    except Exception:
        pass
    return min(int(cap * 3 // 4), 100 * 1024 * 1024)


def _pick_tile(dim, target):
    """Largest multiple of 8 <= target that evenly divides `dim` (else `dim` itself)."""
    if dim <= target:
        return dim
    best = 0
    for t in range(8, target + 1, 8):
        if dim % t == 0:
            best = t
    return best if best else dim


def decoder_layer(x, params, *, n_heads, matmul_dtype=jnp.bfloat16,
                  q_tile=None, kv_tile=None):
    B, S, D = x.shape
    assert D % n_heads == 0
    d_k = D // n_heads
    FF = params["w1"].shape[1]
    wdt = jnp.dtype(matmul_dtype).itemsize

    # ---- weights: fuse QKV and cast to MXU dtype ONCE, in the wrapper ----
    wqkv = jnp.concatenate([params["wq"], params["wk"], params["wv"]],
                           axis=1).astype(matmul_dtype)                 # (D, 3D)
    bqkv = jnp.concatenate([params["bq"], params["bk"], params["bv"]], axis=1)  # (1,3D) f32
    wo = params["wo"].astype(matmul_dtype)
    w1 = params["w1"].astype(matmul_dtype)
    w2 = params["w2"].astype(matmul_dtype)

    # ---- generation-aware VMEM budget & tiles ----
    vmem_limit = _vmem_limit_bytes()
    small_vmem = vmem_limit <= 48 * 1024 * 1024                 # v7x-class (64 MiB VMEM)
    ts = _pick_tile(S, 256 if small_vmem else 512)              # projection seq tile
    tq = q_tile or _pick_tile(S, 256 if small_vmem else 512)    # query tile
    tkv = kv_tile or _pick_tile(S, 512)                         # KV tile (>=256 -> MXU depth)

    def cparams(sem):
        return pltpu.CompilerParams(dimension_semantics=sem,
                                    vmem_limit_bytes=vmem_limit)

    # ============== kernel 1: fused QKV projection ==============
    hm_spec = lambda t: pl.BlockSpec((1, n_heads, t, d_k), lambda b, si: (b, 0, si, 0))
    proj_flops = 2 * B * S * D * 3 * D
    proj_bytes = int(4 * B * S * D + wdt * D * 3 * D + 4 * 3 * D + wdt * 3 * B * S * D)

    q, k, v = pl.pallas_call(
        functools.partial(qkv_proj_kernel, n_heads=n_heads),
        out_shape=[jax.ShapeDtypeStruct((B, n_heads, S, d_k), matmul_dtype)] * 3,
        grid_spec=pltpu.PrefetchScalarGridSpec(
            num_scalar_prefetch=0,
            grid=(B, S // ts),
            in_specs=[
                pl.BlockSpec((1, ts, D), lambda b, si: (b, si, 0)),     # x
                pl.BlockSpec((D, 3 * D), lambda b, si: (0, 0)),         # wqkv (bf16)
                pl.BlockSpec((1, 3 * D), lambda b, si: (0, 0)),         # bqkv
            ],
            out_specs=[hm_spec(ts), hm_spec(ts), hm_spec(ts)],
        ),
        compiler_params=cparams(("parallel", "parallel")),
        cost_estimate=pl.CostEstimate(flops=proj_flops, transcendentals=0,
                                      bytes_accessed=proj_bytes),
    )(x, wqkv, bqkv)

    # ============== kernel 2: flash attention + FFN + LayerNorms ==============
    nq, nkv = S // tq, S // tkv
    attn_flops = B * (4 * S * S * D + 2 * S * D * D + 4 * S * D * FF)
    attn_trans = B * (2 * n_heads * S * S + 2 * S)
    attn_bytes = int(4 * 2 * B * S * D + wdt * 3 * B * S * D * max(nq, 1)
                     + wdt * (D * D + 2 * D * FF) + 4 * (6 * D + FF))

    full2 = lambda shape: pl.BlockSpec(shape, lambda b, qi, ki: (0, 0))

    out = pl.pallas_call(
        functools.partial(attn_ffn_kernel, n_heads=n_heads),
        out_shape=jax.ShapeDtypeStruct((B, S, D), jnp.float32),
        grid_spec=pltpu.PrefetchScalarGridSpec(
            num_scalar_prefetch=0,
            grid=(B, nq, nkv),
            in_specs=[
                pl.BlockSpec((1, tq, D), lambda b, qi, ki: (b, qi, 0)),                 # x
                pl.BlockSpec((1, n_heads, tq, d_k), lambda b, qi, ki: (b, 0, qi, 0)),   # q
                pl.BlockSpec((1, n_heads, tkv, d_k), lambda b, qi, ki: (b, 0, ki, 0)),  # k
                pl.BlockSpec((1, n_heads, tkv, d_k), lambda b, qi, ki: (b, 0, ki, 0)),  # v
                full2((D, D)), full2((1, D)),      # wo (bf16), bo
                full2((D, FF)), full2((1, FF)),    # w1 (bf16), b1
                full2((FF, D)), full2((1, D)),     # w2 (bf16), b2
                full2((1, D)), full2((1, D)),      # gamma1, beta1
                full2((1, D)), full2((1, D)),      # gamma2, beta2
            ],
            out_specs=pl.BlockSpec((1, tq, D), lambda b, qi, ki: (b, qi, 0)),
            scratch_shapes=[
                pltpu.VMEM((n_heads, tq, 1), jnp.float32),    # running max
                pltpu.VMEM((n_heads, tq, 1), jnp.float32),    # running denom
                pltpu.VMEM((n_heads, tq, d_k), jnp.float32),  # running PV accumulator
            ],
        ),
        compiler_params=cparams(("parallel", "parallel", "arbitrary")),
        cost_estimate=pl.CostEstimate(flops=attn_flops, transcendentals=attn_trans,
                                      bytes_accessed=attn_bytes),
    )(x, q, k, v,
      wo, params["bo"], w1, params["b1"], w2, params["b2"],
      params["g1"], params["be1"], params["g2"], params["be2"])

    # q/k/v already come out of the kernel in torch's (B, H, S, d_k) layout — no wrapper
    # transpose (the old reshape/transpose was a full HBM round trip, not free).
    return out, q, k, v


# --------------------------------------------------------------------------------------
# Deterministic init + pure-JAX reference
# --------------------------------------------------------------------------------------
def _init_params(key, d_model, n_heads, ff_hidden):
    """Deterministic init mimicking torch Linear default (uniform +/- 1/sqrt(fan_in))."""
    keys = jax.random.split(key, 12)

    def lin(kw, kb, fan_in, fan_out):
        bound = 1.0 / math.sqrt(fan_in)
        # torch stores weight as (out, in); we pass it transposed as (in, out)
        w = jax.random.uniform(kw, (fan_out, fan_in), jnp.float32, -bound, bound).T
        b = jax.random.uniform(kb, (1, fan_out), jnp.float32, -bound, bound)
        return w, b

    wq, bq = lin(keys[0], keys[1], d_model, d_model)
    wk, bk = lin(keys[2], keys[3], d_model, d_model)
    wv, bv = lin(keys[4], keys[5], d_model, d_model)
    wo, bo = lin(keys[6], keys[7], d_model, d_model)
    w1, b1 = lin(keys[8], keys[9], d_model, ff_hidden)
    w2, b2 = lin(keys[10], keys[11], ff_hidden, d_model)

    return dict(
        wq=wq, bq=bq, wk=wk, bk=bk, wv=wv, bv=bv, wo=wo, bo=bo,
        w1=w1, b1=b1, w2=w2, b2=b2,
        g1=jnp.ones((1, d_model), jnp.float32), be1=jnp.zeros((1, d_model), jnp.float32),
        g2=jnp.ones((1, d_model), jnp.float32), be2=jnp.zeros((1, d_model), jnp.float32),
    )


def _reference(x, p, n_heads):
    """Pure-JAX f32 reference mirroring the PyTorch forward."""
    B, S, D = x.shape
    d_k = D // n_heads
    q = x @ p["wq"] + p["bq"][0]
    k = x @ p["wk"] + p["bk"][0]
    v = x @ p["wv"] + p["bv"][0]
    qh = q.reshape(B, S, n_heads, d_k).transpose(0, 2, 1, 3)
    kh = k.reshape(B, S, n_heads, d_k).transpose(0, 2, 1, 3)
    vh = v.reshape(B, S, n_heads, d_k).transpose(0, 2, 1, 3)
    scores = jnp.einsum("bhqd,bhkd->bhqk", qh, kh) / math.sqrt(d_k)
    w = jax.nn.softmax(scores, axis=-1)
    attn = jnp.einsum("bhqk,bhkd->bhqd", w, vh)
    attn = attn.transpose(0, 2, 1, 3).reshape(B, S, D)
    attn = attn @ p["wo"] + p["bo"][0]
    y = _layer_norm(x + attn, p["g1"][0], p["be1"][0])
    ff = jnp.maximum(y @ p["w1"] + p["b1"][0], 0.0) @ p["w2"] + p["b2"][0]
    out = _layer_norm(y + ff, p["g2"][0], p["be2"][0])
    return out, qh, kh, vh


if __name__ == "__main__":
    B, S, D, H_HEADS, FF = 2, 8, 32, 4, 64

    key = jax.random.PRNGKey(0)
    kx, kp = jax.random.split(key)
    x = jax.random.normal(kx, (B, S, D), jnp.float32)
    params = _init_params(kp, D, H_HEADS, FF)

    out, q, k, v = decoder_layer(x, params, n_heads=H_HEADS)
    jax.block_until_ready(out)

    ref_out, ref_q, ref_k, ref_v = _reference(x, params, H_HEADS)
    # bf16 MXU operands + bf16 q/k/v writeback => tolerances looser than an f32 kernel.
    assert jnp.allclose(q.astype(jnp.float32), ref_q, atol=2e-2, rtol=2e-2)
    assert jnp.allclose(k.astype(jnp.float32), ref_k, atol=2e-2, rtol=2e-2)
    assert jnp.allclose(v.astype(jnp.float32), ref_v, atol=2e-2, rtol=2e-2)
    assert jnp.allclose(out, ref_out, atol=5e-2, rtol=5e-2)

    print("KERNEL_OK")
</pallas_src>

<mosaic_0001>
module attributes {stable_mosaic.version = 11 : i64} {
  func.func @qkv_proj_kernel(%arg0: i32, %arg1: i32, %arg2: memref<1x8x32xf32, #tpu.memory_space<vmem>>, %arg3: memref<32x96xbf16, #tpu.memory_space<vmem>>, %arg4: memref<1x96xf32, #tpu.memory_space<vmem>>, %arg5: memref<1x4x8x8xbf16, #tpu.memory_space<vmem>>, %arg6: memref<1x4x8x8xbf16, #tpu.memory_space<vmem>>, %arg7: memref<1x4x8x8xbf16, #tpu.memory_space<vmem>>) attributes {dimension_semantics = [#tpu.dimension_semantics<parallel>, #tpu.dimension_semantics<parallel>], iteration_bounds = array<i64: 2, 1>, scalar_prefetch = 0 : i64, scratch_operands = 0 : i64, tpu.core_type = #tpu.core_type<tc>, window_params = [{transform_indices = @transform_0, window_bounds = array<i64: 1, 8, 32>}, {pipeline_mode = #tpu.pipeline_mode<synchronous>, transform_indices = @transform_1, window_bounds = array<i64: 32, 96>}, {pipeline_mode = #tpu.pipeline_mode<synchronous>, transform_indices = @transform_2, window_bounds = array<i64: 1, 96>}, {transform_indices = @transform_3, window_bounds = array<i64: 1, 4, 8, 8>}, {transform_indices = @transform_4, window_bounds = array<i64: 1, 4, 8, 8>}, {transform_indices = @transform_5, window_bounds = array<i64: 1, 4, 8, 8>}]} {
    %c0 = arith.constant 0 : index
    %c0_0 = arith.constant 0 : index
    %c0_1 = arith.constant 0 : index
    %0 = vector.load %arg2[%c0, %c0_0, %c0_1] : memref<1x8x32xf32, #tpu.memory_space<vmem>>, vector<1x8x32xf32>
    %1 = vector.shape_cast %0 : vector<1x8x32xf32> to vector<8x32xf32>
    %2 = arith.truncf %1 : vector<8x32xf32> to vector<8x32xbf16>
    %c0_2 = arith.constant 0 : index
    %c0_3 = arith.constant 0 : index
    %3 = vector.load %arg3[%c0_2, %c0_3] : memref<32x96xbf16, #tpu.memory_space<vmem>>, vector<32x96xbf16>
    %cst = arith.constant dense<0.000000e+00> : vector<8x96xf32>
    %4 = tpu.matmul %2, %3, %cst {dimension_numbers = #tpu.dot_dimension_numbers<[1], [0], [0], [1], [0, 0, 1, 1], [], []>} : vector<8x32xbf16>, vector<32x96xbf16>, vector<8x96xf32> -> vector<8x96xf32>
    %c0_4 = arith.constant 0 : index
    %c0_5 = arith.constant 0 : index
    %5 = vector.load %arg4[%c0_4, %c0_5] : memref<1x96xf32, #tpu.memory_space<vmem>>, vector<1x96xf32>
    %6 = vector.shape_cast %5 : vector<1x96xf32> to vector<96xf32>
    %7 = vector.shape_cast %6 : vector<96xf32> to vector<1x96xf32>
    %8 = vector.broadcast %7 : vector<1x96xf32> to vector<8x96xf32>
    %9 = arith.addf %4, %8 : vector<8x96xf32>
    %10 = arith.truncf %9 : vector<8x96xf32> to vector<8x96xbf16>
    %11 = vector.extract_strided_slice %10 {offsets = [0, 0], sizes = [8, 32], strides = [1, 1]} : vector<8x96xbf16> to vector<8x32xbf16>
    %12 = vector.shape_cast %11 : vector<8x32xbf16> to vector<8x4x8xbf16>
    %13 = tpu.transpose %12, [1, 0, 2] : vector<8x4x8xbf16> -> vector<4x8x8xbf16>
    %c0_6 = arith.constant 0 : index
    %c0_7 = arith.constant 0 : index
    %c0_8 = arith.constant 0 : index
    %c0_9 = arith.constant 0 : index
    %14 = vector.load %arg5[%c0_6, %c0_7, %c0_8, %c0_9] : memref<1x4x8x8xbf16, #tpu.memory_space<vmem>>, vector<1x4x8x8xbf16>
    %15 = vector.shape_cast %14 : vector<1x4x8x8xbf16> to vector<4x8x8xbf16>
    %16 = vector.shape_cast %13 : vector<4x8x8xbf16> to vector<1x4x8x8xbf16>
    tpu.vector_store %arg5[%c0_6, %c0_7, %c0_8, %c0_9], %16 {strides = array<i32>} : memref<1x4x8x8xbf16, #tpu.memory_space<vmem>>, vector<1x4x8x8xbf16>,
    %17 = vector.extract_strided_slice %10 {offsets = [0, 32], sizes = [8, 32], strides = [1, 1]} : vector<8x96xbf16> to vector<8x32xbf16>
    %18 = vector.shape_cast %17 : vector<8x32xbf16> to vector<8x4x8xbf16>
    %19 = tpu.transpose %18, [1, 0, 2] : vector<8x4x8xbf16> -> vector<4x8x8xbf16>
    %c0_10 = arith.constant 0 : index
    %c0_11 = arith.constant 0 : index
    %c0_12 = arith.constant 0 : index
    %c0_13 = arith.constant 0 : index
    %20 = vector.load %arg6[%c0_10, %c0_11, %c0_12, %c0_13] : memref<1x4x8x8xbf16, #tpu.memory_space<vmem>>, vector<1x4x8x8xbf16>
    %21 = vector.shape_cast %20 : vector<1x4x8x8xbf16> to vector<4x8x8xbf16>
    %22 = vector.shape_cast %19 : vector<4x8x8xbf16> to vector<1x4x8x8xbf16>
    tpu.vector_store %arg6[%c0_10, %c0_11, %c0_12, %c0_13], %22 {strides = array<i32>} : memref<1x4x8x8xbf16, #tpu.memory_space<vmem>>, vector<1x4x8x8xbf16>,
    %23 = vector.extract_strided_slice %10 {offsets = [0, 64], sizes = [8, 32], strides = [1, 1]} : vector<8x96xbf16> to vector<8x32xbf16>
    %24 = vector.shape_cast %23 : vector<8x32xbf16> to vector<8x4x8xbf16>
    %25 = tpu.transpose %24, [1, 0, 2] : vector<8x4x8xbf16> -> vector<4x8x8xbf16>
    %c0_14 = arith.constant 0 : index
    %c0_15 = arith.constant 0 : index
    %c0_16 = arith.constant 0 : index
    %c0_17 = arith.constant 0 : index
    %26 = vector.load %arg7[%c0_14, %c0_15, %c0_16, %c0_17] : memref<1x4x8x8xbf16, #tpu.memory_space<vmem>>, vector<1x4x8x8xbf16>
    %27 = vector.shape_cast %26 : vector<1x4x8x8xbf16> to vector<4x8x8xbf16>
    %28 = vector.shape_cast %25 : vector<4x8x8xbf16> to vector<1x4x8x8xbf16>
    tpu.vector_store %arg7[%c0_14, %c0_15, %c0_16, %c0_17], %28 {strides = array<i32>} : memref<1x4x8x8xbf16, #tpu.memory_space<vmem>>, vector<1x4x8x8xbf16>,
    return
  }
  func.func @transform_0(%arg0: i32, %arg1: i32) -> (i32, i32, i32) {
    %c0_i32 = arith.constant 0 : i32
    %c0_i32_0 = arith.constant 0 : i32
    return %arg0, %arg1, %c0_i32 : i32, i32, i32
  }
  func.func @transform_1(%arg0: i32, %arg1: i32) -> (i32, i32) {
    %c0_i32 = arith.constant 0 : i32
    %c0_i32_0 = arith.constant 0 : i32
    %c0_i32_1 = arith.constant 0 : i32
    return %c0_i32, %c0_i32_0 : i32, i32
  }
  func.func @transform_2(%arg0: i32, %arg1: i32) -> (i32, i32) {
    %c0_i32 = arith.constant 0 : i32
    %c0_i32_0 = arith.constant 0 : i32
    %c0_i32_1 = arith.constant 0 : i32
    return %c0_i32, %c0_i32_0 : i32, i32
  }
  func.func @transform_3(%arg0: i32, %arg1: i32) -> (i32, i32, i32, i32) {
    %c0_i32 = arith.constant 0 : i32
    %c0_i32_0 = arith.constant 0 : i32
    %c0_i32_1 = arith.constant 0 : i32
    return %arg0, %c0_i32, %arg1, %c0_i32_0 : i32, i32, i32, i32
  }
  func.func @transform_4(%arg0: i32, %arg1: i32) -> (i32, i32, i32, i32) {
    %c0_i32 = arith.constant 0 : i32
    %c0_i32_0 = arith.constant 0 : i32
    %c0_i32_1 = arith.constant 0 : i32
    return %arg0, %c0_i32, %arg1, %c0_i32_0 : i32, i32, i32, i32
  }
  func.func @transform_5(%arg0: i32, %arg1: i32) -> (i32, i32, i32, i32) {
    %c0_i32 = arith.constant 0 : i32
    %c0_i32_0 = arith.constant 0 : i32
    %c0_i32_1 = arith.constant 0 : i32
    return %arg0, %c0_i32, %arg1, %c0_i32_0 : i32, i32, i32, i32
  }
}

</mosaic_0001>

<bundles_post_ra>
// kernel: tpu_custom_call.1
= control target key start
LH: loop header
LB: loop body
LE: loop exit
PB: predicated region body
PF: predicated region fallthrough
CT: control target
= control target key end

     0   :  { %s1652_s0 = inlined_call_operand.hbm [shape: f32[2,8,32], index: 0, kind: input, shape index: {}]   ;;  %s1653_s1 = inlined_call_operand.hbm [shape: bf16[32,96], index: 1, kind: input, shape index: {}]   ;;  %s1654_s2 = inlined_call_operand.vmem [shape: f32[1,96], index: 2, kind: input, shape index: {}]   ;;  %s1655_s3 = inlined_call_operand.hbm [shape: bf16[2,4,8,8], index: 3, kind: output, shape index: {0}]   ;;  %s1656_s4 = inlined_call_operand.hbm [shape: bf16[2,4,8,8], index: 4, kind: output, shape index: {1}]   ;;  %s1657_s5 = inlined_call_operand.hbm [shape: bf16[2,4,8,8], index: 5, kind: output, shape index: {2}]  }
   0x1   :  { %1661 = sst [smem:[#allocation15_spill]] %s1652_s0 }
   0x2   :  { %1662 = sst [smem:[#allocation16_spill]] %s1653_s1 }
   0x3   :  { %11 = vsyncpa [#allocation3], 0 }
   0x4   :  { %13 = vsyncpa [#allocation3 + $0x1], 0 }
   0x5   :  { %14 = vsyncpa [#allocation6], 0 }
   0x6   :  { %15 = vsyncpa [#allocation4], 0 }
   0x7   :  { %17 = vsyncpa [#allocation4 + $0x1], 0 }
   0x8   :  { %18 = vsyncpa [#allocation9], 0 }
   0x9   :  { %20 = vsyncpa [#allocation9 + $0x1], 0  ;;  %s1335_s18 = smov 0   ;;  %s1337_s19 = smov 0  }
   0xa   :  { %s1339_s20 = smov 0   ;;  %s1341_s21 = smov 0  }
   0xb   :  { %s1343_s22 = smov 0   ;;  %s1345_s23 = smov 0  }
   0xc LB: > { %s1366_s24 = sadd.s32 4294967295, %s1292_s23   ;;  %p956_p0 = scmp.ge.s32.totalorder %s1292_s23, 1  ;;  %s1292_s23 = sphi %s1345_s23, %s26_s23   ;;  %s1288_s22 = sphi %s1343_s22, %s1676_s22   ;;  %s1284_s21 = sphi %s1341_s21, %s1675_s21   ;;  %s1280_s20 = sphi %s1339_s20, %s1674_s20   ;;  %s1276_s19 = sphi %s1337_s19, %s1673_s19   ;;  %s1272_s18 = sphi %s1335_s18, %s1672_s18  }
   0xd   : > { %p61_p1 = scmp.eq.s32.totalorder %s1366_s24, 0  ;;  %p197_p2 = scmp.lt.s32.totalorder %s1292_s23, 3 }
   0xe   : > { %s1663_s1 = sld [smem:[#allocation16_spill]]  ;;  %s1294_s29 = smov [#allocation5]  }
   0xf   : > { %p1374_p3 = pnand %p956_p0, %p197_p2  ;;  %s210_s30 = sshll.u32 %s1294_s29, 4  ;;  %s211_s30 = int_to_ptr.vmem [resolvable:$true] %s210_s30 }
  0x10   : > { %p958_p6 = scmp.ge.s32.totalorder %s1292_s23, 2  ;;  %s1295_s6 = smov 64  }
  0x11   : > { %p1004_p4 = pneg %p1374_p3  ;;  %s1296_s7 = smov 4  }
  0x12   : > { %s1658_s8 = sadd.s32 4294967294, %s1292_s23   ;;  %s38_s9 = sadd.s32 1, %s1288_s22 }
  0x13   : > { %p1005_p5 = pnand %p1004_p4, %p61_p1  ;;  %s47_s10 = sadd.s32 1, %s1280_s20 }
  0x14   : > { %s208_s27 = sshll.u32 %s1663_s1, 4  ;;  %p40_p7 = scmp.ge.s32.totalorder %s38_s9, 2  ;;  %s209_s27 = int_to_ptr.hbm [resolvable:$true] %s208_s27 }
  0x15   : > { %1007 = dma.hbm_to_vmem [thread:$0]  (!%p1005_p5), %s209_s27, 256, %s211_s30, [#allocation6], %s1295_s6, %s1295_s6, %s1296_s7  }
  0x16   : > { %p54_p8 = scmp.ne.s32.totalorder %s1280_s20, %s1276_s19  ;;  %p55_p9 = scmp.eq.s32.totalorder %s1292_s23, 0 }
  0x17   : > { %p60_p10 = scmp.ne.s32.totalorder %s1276_s19, %s1272_s18  ;;  %s1678_s9 = smov (%p40_p7, %s38_s9), 0 }
  0x18   : > { %p1393_p11 = por %p55_p9, %p54_p8  ;;  %s42_s13 = ssub.s32 %s1288_s22, %s1678_s9 }
  0x19   : > { %p1399_p12 = por %p61_p1, %p60_p10  ;;  %p128_p13 = scmp.eq.s32.totalorder %s1366_s24, 1 }
  0x1a   : > { %p45_p0 = scmp.eq.s32.totalorder %s42_s13, 0  ;;  %p134_p2 = scmp.eq.s32.totalorder %s1658_s8, 1 }
  0x1b   : > { %p1408_p4 = por %p128_p13, %p54_p8  ;;  %p1023_p5 = scmp.lt.s32.totalorder %s1292_s23, 2 }
  0x1c   : > { %s1414_s15 = scalar_select %p45_p0, %s1280_s20, %s47_s10  }
  0x1d   : > { %p1416_p7 = por %p134_p2, %p60_p10  ;;  %s227_s17 = sand.u32 1, %s1280_s20  }
  0x1e   : > { %s959_s25 = sshll.u32 %s227_s17, 3  ;;  %s960_s26 = sshll.u32 %s1288_s22, 3 }
  0x1f   : > { %s1669_s0 = sld [smem:[#allocation15_spill]]  ;;  %s231_s6 = scalar_lea.vmem [#allocation2], %s959_s25 }
  0x20   : > { %s240_s7 = sshll.u32 %s231_s6, 4  ;;  %p1009_p8 = pnand %p1023_p5, %p1393_p11  ;;  %s241_s7 = int_to_ptr.vmem [resolvable:$true] %s240_s7 }
  0x21   : > { %s228_s10 = scalar_lea.sflag [#allocation3], %s227_s17  ;;  %s1430_s8 = sand.u32 (!%p1374_p3), 1, %s1276_s19  }
  0x22   : > { %s962_s27 = sshll.u32 (!%p1374_p3), %s1430_s8, 3 }
  0x23   : > { %249 = sbr.rel (%p1374_p3) target bundleno = 467 (0x1d3), region = 32  ;;  %s255_s25 = scalar_lea.vmem (!%p1374_p3), [#allocation2], %s962_s27 }
  0x25   : > { %s236_s30 = scalar_lea.hbm %s1669_s0, %s960_s26  ;;  %s252_s26 = scalar_lea.sflag (!%p1374_p3), [#allocation3], %s1430_s8 }
  0x26   : > { %s238_s13 = sshll.u32 %s236_s30, 4  ;;  %s239_s13 = int_to_ptr.hbm [resolvable:$true] %s238_s13 }
  0x27   : > { %1011 = dma.hbm_to_vmem [thread:$0]  (!%p1009_p8), %s239_s13, 128, %s241_s7, %s228_s10  }
  0x28   : > { %1255 = dma.done.wait (%p1399_p12), %s252_s26, 128  }
  0x29   : > { %1257 = vsyncadd (%p1399_p12), %s252_s26, 4294967168 }
  0x2a   : > { %1259 = dma.done.wait (%p61_p1), [#allocation6], 256  }
  0x2b   : > { %1261 = vsyncadd (%p61_p1), [#allocation6], 4294967040  ;;  %v988_v0 = vld [vmem:[#allocation5 + $0x8] sm:$0xff]  ;;  %v987_v1 = vld [vmem:[#allocation5] sm:$0xff]  ;;  %vm321_vm0 = vcmask 261120   ;;  %s1659_s12 = smov 64  }
  0x2c   : > { %331 = vmatpush.bf16.msra.mxu0 %v988_v0  ;;  %v299_v2 = vld [vmem:[%s255_s25] sm:$0xff]  ;;  %s1298_s17 = smov 104   ;;  %s1299_s29 = smov 120   ;;  %v1302_v9 = vmov 1983009808   ;;  %vm369_vm1 = vcmask 1047556  }
  0x2d   : > { %v300_v3 = vpack.c.bf16 %v299_v2, %v299_v2  ;;  %v1085_v4 = vld [vmem:[%s1654_s2] ss:$0 sm:$0xff]  ;;  %s1300_s30 = smov 96   ;;  %s1301_s6 = smov 112   ;;  %v360_v10 = vunpack.c.l.s4 %v1302_v9  ;;  %v1303_v18 = vmov 1934713408  }
  0x2e   : > { %v374_v19 = vunpack.c.l.s4 %v1303_v18  ;;  %s1480_s7 = sshll.u32 %s1430_s8, 4  ;;  %vm465_vm2 = vcmask 60416   ;;  %s1491_s10 = sshll.u32 %s1284_s21, 4 }
  0x2f   : > { %v1447_v13 = vunpack.c.0.s8 %v360_v10  ;;  %s283_s13 = scalar_lea.vmem [#allocation7], %s1480_s7  ;;  %s753_s25 = scalar_lea.hbm %s1655_s3, %s1491_s10 }
  0x30   : > { %332 = vmatpush.bf16.msra.mxu0 %v987_v1  ;;  %v1452_v26 = vunpack.c.0.s8 %v374_v19  ;;  %s754_s28 = sshll.u32 %s283_s13, 4  ;;  %s756_s11 = sshll.u32 %s753_s25, 4  ;;  %s755_s28 = int_to_ptr.vmem [resolvable:$true] %s754_s28  ;;  %s757_s11 = int_to_ptr.hbm [resolvable:$true] %s756_s11 }
  0x33   : > { %975 = vmatmul.msk.bf16.vlgmr.msra.gmra.mxu0 %vm321_vm0, %v300_v3 }
  0xb0   : > { %v334_v5 = vpop.f32.mrf.mxu0 }
  0xb1   : > { %v335_v6 = vadd.f32 %v1085_v4, %v334_v5 }
  0xb3   : > { %v338_v7 = vpack.c.bf16 %v335_v6, %v335_v6 }
  0xb5   : > { %600 = vrot.lane.b32.xlu2 %v338_v7, %s1659_s12  ;;  %344 = vrot.lane.b32.xlu1 %v338_v7, %s1298_s17  ;;  %v349_v15 = vshrl.u32 %v338_v7, 16  ;;  %s731_s17 = scalar_lea.sflag [#allocation4], %s1430_s8 }
  0xb6   : > { %340 = vrot.lane.b32.xlu0 %v338_v7, %s1299_s29  ;;  %s1160_s29 = sshra.s32 %s757_s11, 4  ;;  %s1161_s29 = int_to_ptr.hbm [resolvable:$true] %s1160_s29 }
  0xb7   : > { %p1167_p10 = scmp.lt.s32.totalorder %s1161_s29, %s1655_s3 }
  0xb8   : > { %v336_v8 = vpop.f32.mrf.mxu0 }
  0xbd   : > { %470 = vrot.lane.b32.xlu1 %v338_v7, %s1300_s30 }
  0xbe   : > { %342 = vrot.lane.b32.xlu0 %v338_v7, %s1301_s6 }
 0x127   : > { %v345_v17 = vpop.permute.xlu1 %344 }
 0x128   : > { %v341_v11 = vpop.permute.xlu0 %340  ;;  %v356_v22 = vshrl.u32 %v345_v17, 16 }
 0x129   : > { %v350_v12 = vshrl.u32 %v341_v11, 16  ;;  %602 = vrot.lane.b32.xlu0 %v341_v11, %s1659_s12  ;;  %472 = vrot.lane.b32.xlu2 %v341_v11, %s1300_s30  ;;  %v348_v14 = vpack.i.b16 %v341_v11, %v338_v7 }
 0x12b   : > { %v351_v16 = vpack.i.b16 %v350_v12, %v349_v15  ;;  %v362_v20 = vperm.slane %v348_v14, %v1447_v13 }
 0x12d   : > { %v389_v23 = vperm.slane %v351_v16, %v1447_v13  ;;  %v371_v27 = vrot.slane %v362_v20, 4 }
 0x12f   : > { %v397_v30 = vrot.slane %v389_v23, 4 }
 0x130   : > { %v343_v21 = vpop.permute.xlu0 %342 }
 0x131   : > { %v354_v24 = vpack.i.b16 %v345_v17, %v343_v21  ;;  %v355_v25 = vshrl.u32 %v343_v21, 16  ;;  %476 = vrot.lane.b32.xlu2 %v345_v17, %s1300_s30  ;;  %604 = vrot.lane.b32.xlu0 %v343_v21, %s1659_s12 }
 0x132   : > { %474 = vrot.lane.b32.xlu1 %v343_v21, %s1300_s30  ;;  %s1162_s30 = scalar_lea.hbm %s1161_s29, 16 }
 0x133   : > { %v357_v28 = vpack.i.b16 %v356_v22, %v355_v25  ;;  %v367_v29 = vperm.slane %v354_v24, %v1447_v13  ;;  %p1163_p1 = scmp.ne.s32.totalorder %s1161_s29, %s1162_s30 }
 0x135   : > { %v368_v31 = vrot.slane %v367_v29, 4  ;;  %v372_v32 = vsel %vm369_vm1, %v367_v29, %v371_v27  ;;  %v394_v33 = vperm.slane %v357_v28, %v1447_v13  ;;  %p1164_p3 = pnand %p1163_p1, %p1408_p4 }
 0x136   : > { %v380_v34 = vperm.slane %v372_v32, %v1452_v26 }
 0x137   : > { %v370_v35 = vsel %vm369_vm1, %v368_v31, %v362_v20  ;;  %v395_v36 = vrot.slane %v394_v33, 4  ;;  %v398_v37 = vsel %vm369_vm1, %v394_v33, %v397_v30  ;;  %p1165_p9 = pneg %p1164_p3 }
 0x138   : > { %v376_v38 = vperm.slane %v370_v35, %v1452_v26  ;;  %v383_v39 = vrot.slane %v380_v34, 4  ;;  %v406_v40 = vperm.slane %v398_v37, %v1452_v26 }
 0x139   : > { %v396_v41 = vsel %vm369_vm1, %v395_v36, %v389_v23 }
 0x13a   : > { %v381_v42 = vrot.slane %v376_v38, 4  ;;  %v384_v43 = vsel %vm369_vm1, 0, %v383_v39  ;;  %v402_v44 = vperm.slane %v396_v41, %v1452_v26  ;;  %v409_v45 = vrot.slane %v406_v40, 4  ;;  %606 = vrot.lane.b32.xlu1 %v345_v17, %s1659_s12  ;;  %s1166_s12 = scalar_lea.hbm %s1655_s3, 32 }
 0x13b   : > { %v416_v46 = vrot.slane %v384_v43, 4  ;;  %v411_v50 = vsel %vm369_vm1, %v383_v39, %v376_v38  ;;  %p1168_p11 = scmp.lt.s32.totalorder %s1166_s12, %s1162_s30 }
 0x13c   : > { %v382_v47 = vsel %vm369_vm1, 0, %v381_v42  ;;  %v407_v48 = vrot.slane %v402_v44, 4  ;;  %v410_v49 = vsel %vm369_vm1, 0, %v409_v45  ;;  %v430_v55 = vsel %vm369_vm1, %v409_v45, %v402_v44 }
 0x13d   : > { %v417_v51 = vsel %vm369_vm1, %v416_v46, %v382_v47  ;;  %v435_v52 = vrot.slane %v410_v49, 4  ;;  %v415_v57 = vperm.slane %v411_v50, %v1447_v13  ;;  %v434_v61 = vperm.slane %v430_v55, %v1447_v13  ;;  %p1169_p12 = por %p1168_p11, %p1167_p10 }
 0x13e   : > { %v408_v53 = vsel %vm369_vm1, 0, %v407_v48  ;;  %v421_v54 = vperm.slane %v417_v51, %v1447_v13 }
 0x13f   : > { %v436_v56 = vsel %vm369_vm1, %v435_v52, %v408_v53  ;;  %p1170_p13 = pnand %p1169_p12, %p1165_p9 }
 0x140   : > { %v422_v58 = vrot.slane %v421_v54, 4  ;;  %v440_v59 = vperm.slane %v436_v56, %v1447_v13 }
 0x142   : > { %v423_v60 = vsel %vm369_vm1, %v422_v58, %v415_v57  ;;  %v441_v62 = vrot.slane %v440_v59, 4 }
 0x143   : > { %v427_v63 = vperm.slane %v423_v60, %v1452_v26 }
 0x144   : > { %v442_v0 = vsel %vm369_vm1, %v441_v62, %v434_v61 }
 0x145   : > { %v428_v1 = vrot.slane %v427_v63, 4  ;;  %v446_v2 = vperm.slane %v442_v0, %v1452_v26  ;;  %v453_v3 = vshrl.u32 %v427_v63, 16 }
 0x147   : > { %v429_v4 = vsel %vm369_vm1, 0, %v428_v1  ;;  %v447_v5 = vrot.slane %v446_v2, 4  ;;  %v451_v6 = vpack.i.b16 %v446_v2, %v427_v63  ;;  %v454_v7 = vshrl.u32 %v446_v2, 16 }
 0x148   : > { %v461_v11 = vshrl.u32 %v429_v4, 16 }
 0x149   : > { %v448_v8 = vsel %vm369_vm1, 0, %v447_v5  ;;  %v455_v9 = vpack.i.b16 %v454_v7, %v453_v3  ;;  %466 = vst.msk [vmem:[%s283_s13] sm:$0xf] %vm465_vm2, %v451_v6 }
 0x14a   : > { %v459_v10 = vpack.i.b16 %v448_v8, %v429_v4  ;;  %v462_v12 = vshrl.u32 %v448_v8, 16 }
 0x14b   : > { %467 = vst.msk [vmem:[%s283_s13 + $0x4] sm:$0xf] %vm465_vm2, %v455_v9 }
 0x14c   : > { %v463_v14 = vpack.i.b16 %v462_v12, %v461_v11  ;;  %468 = vst.msk [vmem:[%s283_s13 + $0x8] sm:$0xf] %vm465_vm2, %v459_v10 }
 0x14e   : > { %469 = vst.msk [vmem:[%s283_s13 + $0xc] sm:$0xf] %vm465_vm2, %v463_v14 }
 0x14f   : > { %1173 = shalt.err (!%p1170_p13)
}
 0x150   : > { %s1304_s8 = smov 4   ;;  %s1670_s13 = smov 64   ;;  %v601_v15 = vpop.permute.xlu2 %600  ;;  %v471_v17 = vpop.permute.xlu1 %470 }
 0x151   : > { %998 = dma.vmem_to_hbm [thread:$0]  (%p1408_p4), %s755_s28, 256, %s757_s11, %s731_s17, %s1670_s13, %s1670_s13, %s1304_s8   ;;  %v481_v19 = vshrl.u32 %v471_v17, 16  ;;  %v611_v32 = vshrl.u32 %v601_v15, 16 }
 0x152   : > { %s771_s12 = scalar_lea.hbm %s1656_s4, %s1491_s10  ;;  %s735_s27 = sand.u32 1, %s1366_s24  }
 0x153   : > { %s290_s26 = scalar_lea.vmem [#allocation8], %s1480_s7  ;;  %s1568_s28 = sshll.u32 %s771_s12, 4  ;;  %s775_s28 = int_to_ptr.hbm [resolvable:$true] %s1568_s28 }
 0x154   : > { %s772_s25 = sshll.u32 %s290_s26, 4  ;;  %s1581_s24 = scalar_lea.sflag [#allocation9], %s735_s27  ;;  %s773_s25 = int_to_ptr.vmem [resolvable:$true] %s772_s25 }
 0x155   : > { %s1188_s11 = sshra.s32 %s775_s28, 4  ;;  %s1194_s21 = scalar_lea.hbm %s1656_s4, 32  ;;  %s1189_s11 = int_to_ptr.hbm [resolvable:$true] %s1188_s11 }
 0x156   : > { %s1190_s17 = scalar_lea.hbm %s1189_s11, 16  ;;  %p1195_p8 = scmp.lt.s32.totalorder %s1189_s11, %s1656_s4 }
 0x157   : > { %p1191_p0 = scmp.ne.s32.totalorder %s1189_s11, %s1190_s17  ;;  %p1196_p1 = scmp.lt.s32.totalorder %s1194_s21, %s1190_s17 }
 0x159   : > { %p1192_p2 = pnand %p1191_p0, %p1408_p4  ;;  %p1197_p3 = por %p1196_p1, %p1195_p8 }
 0x15b   : > { %p1193_p5 = pneg %p1192_p2 }
 0x15d   : > { %p1198_p9 = pnand %p1197_p3, %p1193_p5 }
 0x183   : > { %v473_v16 = vpop.permute.xlu2 %472 }
 0x184   : > { %v482_v18 = vshrl.u32 %v473_v16, 16  ;;  %v480_v20 = vpack.i.b16 %v473_v16, %v471_v17 }
 0x186   : > { %v483_v22 = vpack.i.b16 %v482_v18, %v481_v19  ;;  %v494_v24 = vperm.slane %v480_v20, %v1447_v13 }
 0x188   : > { %v520_v28 = vperm.slane %v483_v22, %v1447_v13  ;;  %v502_v33 = vrot.slane %v494_v24, 4 }
 0x18a   : > { %v528_v38 = vrot.slane %v520_v28, 4 }
 0x18b   : > { %v477_v23 = vpop.permute.xlu2 %476 }
 0x18c   : > { %v488_v29 = vshrl.u32 %v477_v23, 16 }
 0x19b   : > { %v603_v21 = vpop.permute.xlu0 %602 }
 0x19c   : > { %v612_v25 = vshrl.u32 %v603_v21, 16  ;;  %v610_v34 = vpack.i.b16 %v603_v21, %v601_v15 }
 0x19e   : > { %v613_v37 = vpack.i.b16 %v612_v25, %v611_v32  ;;  %v624_v44 = vperm.slane %v610_v34, %v1447_v13 }
 0x1a0   : > { %v650_v48 = vperm.slane %v613_v37, %v1447_v13  ;;  %v632_v61 = vrot.slane %v624_v44, 4 }
 0x1a2   : > { %v658_v1 = vrot.slane %v650_v48, 4 }
 0x1a3   : > { %v605_v43 = vpop.permute.xlu0 %604 }
 0x1a4   : > { %v475_v27 = vpop.permute.xlu1 %474  ;;  %v617_v54 = vshrl.u32 %v605_v43, 16 }
 0x1a5   : > { %v486_v30 = vpack.i.b16 %v477_v23, %v475_v27  ;;  %v487_v31 = vshrl.u32 %v475_v27, 16 }
 0x1a7   : > { %v489_v35 = vpack.i.b16 %v488_v29, %v487_v31  ;;  %v499_v36 = vperm.slane %v486_v30, %v1447_v13 }
 0x1a9   : > { %v500_v39 = vrot.slane %v499_v36, 4  ;;  %v503_v40 = vsel %vm369_vm1, %v499_v36, %v502_v33  ;;  %v525_v41 = vperm.slane %v489_v35, %v1447_v13 }
 0x1aa   : > { %v511_v42 = vperm.slane %v503_v40, %v1452_v26 }
 0x1ab   : > { %v501_v45 = vsel %vm369_vm1, %v500_v39, %v494_v24  ;;  %v526_v46 = vrot.slane %v525_v41, 4  ;;  %v529_v47 = vsel %vm369_vm1, %v525_v41, %v528_v38 }
 0x1ac   : > { %v507_v49 = vperm.slane %v501_v45, %v1452_v26  ;;  %v514_v50 = vrot.slane %v511_v42, 4  ;;  %v537_v51 = vperm.slane %v529_v47, %v1452_v26  ;;  %v607_v52 = vpop.permute.xlu1 %606 }
 0x1ad   : > { %v527_v53 = vsel %vm369_vm1, %v526_v46, %v520_v28  ;;  %v616_v55 = vpack.i.b16 %v607_v52, %v605_v43  ;;  %v618_v56 = vshrl.u32 %v607_v52, 16 }
 0x1ae   : > { %v512_v57 = vrot.slane %v507_v49, 4  ;;  %v515_v58 = vsel %vm369_vm1, 0, %v514_v50  ;;  %v533_v59 = vperm.slane %v527_v53, %v1452_v26  ;;  %v540_v60 = vrot.slane %v537_v51, 4 }
 0x1af   : > { %v547_v62 = vrot.slane %v515_v58, 4  ;;  %v619_v63 = vpack.i.b16 %v618_v56, %v617_v54  ;;  %v629_v0 = vperm.slane %v616_v55, %v1447_v13  ;;  %v542_v5 = vsel %vm369_vm1, %v514_v50, %v507_v49 }
 0x1b0   : > { %v513_v2 = vsel %vm369_vm1, 0, %v512_v57  ;;  %v538_v3 = vrot.slane %v533_v59, 4  ;;  %v541_v4 = vsel %vm369_vm1, 0, %v540_v60  ;;  %v561_v11 = vsel %vm369_vm1, %v540_v60, %v533_v59 }
 0x1b1   : > { %v548_v6 = vsel %vm369_vm1, %v547_v62, %v513_v2  ;;  %v566_v7 = vrot.slane %v541_v4, 4  ;;  %v630_v8 = vrot.slane %v629_v0, 4  ;;  %v633_v12 = vsel %vm369_vm1, %v629_v0, %v632_v61 }
 0x1b2   : > { %v539_v9 = vsel %vm369_vm1, 0, %v538_v3  ;;  %v552_v10 = vperm.slane %v548_v6, %v1447_v13  ;;  %v641_v16 = vperm.slane %v633_v12, %v1452_v26  ;;  %v655_v17 = vperm.slane %v619_v63, %v1447_v13 }
 0x1b3   : > { %v567_v14 = vsel %vm369_vm1, %v566_v7, %v539_v9  ;;  %v631_v15 = vsel %vm369_vm1, %v630_v8, %v624_v44  ;;  %v546_v18 = vperm.slane %v542_v5, %v1447_v13  ;;  %v565_v22 = vperm.slane %v561_v11, %v1447_v13 }
 0x1b4   : > { %v553_v19 = vrot.slane %v552_v10, 4  ;;  %v571_v20 = vperm.slane %v567_v14, %v1447_v13  ;;  %v637_v21 = vperm.slane %v631_v15, %v1452_v26  ;;  %v644_v23 = vrot.slane %v641_v16, 4 }
 0x1b5   : > { %v656_v24 = vrot.slane %v655_v17, 4  ;;  %v659_v25 = vsel %vm369_vm1, %v655_v17, %v658_v1 }
 0x1b6   : > { %v554_v27 = vsel %vm369_vm1, %v553_v19, %v546_v18  ;;  %v572_v28 = vrot.slane %v571_v20, 4  ;;  %v642_v29 = vrot.slane %v637_v21, 4  ;;  %v667_v30 = vperm.slane %v659_v25, %v1452_v26 }
 0x1b7   : > { %v558_v31 = vperm.slane %v554_v27, %v1452_v26  ;;  %v645_v32 = vsel %vm369_vm1, 0, %v644_v23  ;;  %v657_v33 = vsel %vm369_vm1, %v656_v24, %v650_v48  ;;  %v672_v49 = vsel %vm369_vm1, %v644_v23, %v637_v21 }
 0x1b8   : > { %v573_v34 = vsel %vm369_vm1, %v572_v28, %v565_v22  ;;  %v663_v35 = vperm.slane %v657_v33, %v1452_v26  ;;  %v670_v36 = vrot.slane %v667_v30, 4  ;;  %v643_v39 = vsel %vm369_vm1, 0, %v642_v29 }
 0x1b9   : > { %v559_v37 = vrot.slane %v558_v31, 4  ;;  %v577_v38 = vperm.slane %v573_v34, %v1452_v26  ;;  %v584_v40 = vshrl.u32 %v558_v31, 16  ;;  %v677_v43 = vrot.slane %v645_v32, 4 }
 0x1ba   : > { %v668_v41 = vrot.slane %v663_v35, 4  ;;  %v671_v42 = vsel %vm369_vm1, 0, %v670_v36  ;;  %v676_v58 = vperm.slane %v672_v49, %v1447_v13  ;;  %v691_v60 = vsel %vm369_vm1, %v670_v36, %v663_v35 }
 0x1bb   : > { %v560_v44 = vsel %vm369_vm1, 0, %v559_v37  ;;  %v578_v45 = vrot.slane %v577_v38, 4  ;;  %v582_v46 = vpack.i.b16 %v577_v38, %v558_v31  ;;  %v585_v47 = vshrl.u32 %v577_v38, 16 }
 0x1bc   : > { %v669_v48 = vsel %vm369_vm1, 0, %v668_v41  ;;  %v678_v50 = vsel %vm369_vm1, %v677_v43, %v643_v39  ;;  %v696_v54 = vrot.slane %v671_v42, 4  ;;  %v592_v56 = vshrl.u32 %v560_v44, 16 }
 0x1bd   : > { %v579_v51 = vsel %vm369_vm1, 0, %v578_v45  ;;  %v586_v52 = vpack.i.b16 %v585_v47, %v584_v40  ;;  %v682_v53 = vperm.slane %v678_v50, %v1447_v13  ;;  %596 = vst.msk [vmem:[%s290_s26] sm:$0xf] %vm465_vm2, %v582_v46  ;;  %v695_v2 = vperm.slane %v691_v60, %v1447_v13 }
 0x1be   : > { %v590_v55 = vpack.i.b16 %v579_v51, %v560_v44  ;;  %v593_v57 = vshrl.u32 %v579_v51, 16  ;;  %v697_v61 = vsel %vm369_vm1, %v696_v54, %v669_v48 }
 0x1bf   : > { %v683_v59 = vrot.slane %v682_v53, 4  ;;  %597 = vst.msk [vmem:[%s290_s26 + $0x4] sm:$0xf] %vm465_vm2, %v586_v52  ;;  %v701_v63 = vperm.slane %v697_v61, %v1447_v13 }
 0x1c0   : > { %v594_v62 = vpack.i.b16 %v593_v57, %v592_v56  ;;  %598 = vst.msk [vmem:[%s290_s26 + $0x8] sm:$0xf] %vm465_vm2, %v590_v55 }
 0x1c1   : > { %v684_v0 = vsel %vm369_vm1, %v683_v59, %v676_v58  ;;  %v702_v3 = vrot.slane %v701_v63, 4 }
 0x1c2   : > { %v688_v1 = vperm.slane %v684_v0, %v1452_v26  ;;  %599 = vst.msk [vmem:[%s290_s26 + $0xc] sm:$0xf] %vm465_vm2, %v594_v62 }
 0x1c3   : > { %1201 = shalt.err (!%p1198_p9)
}
 0x1c4   : > { %999 = dma.vmem_to_hbm [thread:$0]  (%p1408_p4), %s773_s25, 256, %s775_s28, %s1581_s24, %s1670_s13, %s1670_s13, %s1304_s8   ;;  %v689_v13 = vrot.slane %v688_v1, 4  ;;  %v703_v4 = vsel %vm369_vm1, %v702_v3, %v695_v2  ;;  %v714_v6 = vshrl.u32 %v688_v1, 16 }
 0x1c5   : > { %v707_v5 = vperm.slane %v703_v4, %v1452_v26  ;;  %s789_s27 = scalar_lea.hbm %s1657_s5, %s1491_s10  ;;  %s297_s25 = scalar_lea.vmem [#allocation10], %s1480_s7 }
 0x1c6   : > { %v690_v7 = vsel %vm369_vm1, 0, %v689_v13  ;;  %s1605_s26 = sshll.u32 %s789_s27, 4  ;;  %s790_s28 = sshll.u32 %s297_s25, 4  ;;  %s791_s28 = int_to_ptr.vmem [resolvable:$true] %s790_s28  ;;  %s793_s26 = int_to_ptr.hbm [resolvable:$true] %s1605_s26 }
 0x1c7   : > { %v708_v8 = vrot.slane %v707_v5, 4  ;;  %v712_v9 = vpack.i.b16 %v707_v5, %v688_v1  ;;  %v715_v10 = vshrl.u32 %v707_v5, 16  ;;  %v722_v14 = vshrl.u32 %v690_v7, 16  ;;  %s1216_s10 = sshra.s32 %s793_s26, 4  ;;  %s1222_s29 = scalar_lea.hbm %s1657_s5, 32  ;;  %s1217_s10 = int_to_ptr.hbm [resolvable:$true] %s1216_s10 }
 0x1c8   : > { %s1218_s11 = scalar_lea.hbm %s1217_s10, 16  ;;  %p1223_p13 = scmp.lt.s32.totalorder %s1217_s10, %s1657_s5 }
 0x1c9   : > { %v709_v11 = vsel %vm369_vm1, 0, %v708_v8  ;;  %v716_v12 = vpack.i.b16 %v715_v10, %v714_v6  ;;  %726 = vst.msk [vmem:[%s297_s25] sm:$0xf] %vm465_vm2, %v712_v9  ;;  %p1219_p10 = scmp.ne.s32.totalorder %s1217_s10, %s1218_s11  ;;  %p1224_p0 = scmp.lt.s32.totalorder %s1222_s29, %s1218_s11 }
 0x1ca   : > { %v720_v26 = vpack.i.b16 %v709_v11, %v690_v7  ;;  %v723_v15 = vshrl.u32 %v709_v11, 16 }
 0x1cb   : > { %727 = vst.msk [vmem:[%s297_s25 + $0x4] sm:$0xf] %vm465_vm2, %v716_v12  ;;  %p1220_p11 = pnand %p1219_p10, %p1408_p4  ;;  %p1225_p2 = por %p1224_p0, %p1223_p13 }
 0x1cc   : > { %v724_v16 = vpack.i.b16 %v723_v15, %v722_v14  ;;  %728 = vst.msk [vmem:[%s297_s25 + $0x8] sm:$0xf] %vm465_vm2, %v720_v26 }
 0x1cd   : > { %p1221_p12 = pneg %p1220_p11 }
 0x1ce   : > { %729 = vst.msk [vmem:[%s297_s25 + $0xc] sm:$0xf] %vm465_vm2, %v724_v16 }
 0x1cf   : > { %p1226_p5 = pnand %p1225_p2, %p1221_p12 }
 0x1d1   : > { %1229 = shalt.err (!%p1226_p5)
}
 0x1d2   : > { %1000 = dma.vmem_to_hbm [thread:$0]  (%p1408_p4), %s791_s28, 256, %s793_s26, %s1581_s24, %s1670_s13, %s1670_s13, %s1304_s8  }
 0x1d3 PF: > { %s807_s6 = sand.u32 1, %s1272_s18   ;;  %p1013_p8 = pnand %p958_p6, %p1416_p7 }
 0x1d4   : > { %s808_s0 = scalar_lea.sflag [#allocation4], %s807_s6 }
 0x1d5   : > { %p1014_p1 = pneg %p1013_p8 }
 0x1d7   : > { %1263 = dma.done.wait (%p1014_p1), %s808_s0, 256  }
 0x1d8   : > { %1265 = vsyncadd (%p1014_p1), %s808_s0, 4294967040  ;;  %s1671_s1 = sadd.s32 4294967294, %s1292_s23  }
 0x1d9   : > { %s817_s14 = sand.u32 1, %s1671_s1  }
 0x1da   : > { %s818_s12 = scalar_lea.sflag [#allocation9], %s817_s14 }
 0x1db   : > { %1267 = dma.done.wait (%p1014_p1), %s818_s12, 512  }
 0x1dc   : > { %1269 = vsyncadd (%p1014_p1), %s818_s12, 4294966784  ;;  %s26_s23 = sadd.s32 1, %s1292_s23   ;;  %s1672_s18 = smov %s1276_s19 }
 0x1dd   : > { %p23_p4 = scmp.ge.s32.totalorder %s26_s23, 4   ;;  %s1673_s19 = smov %s1280_s20 }
 0x1de   : > { %s1674_s20 = smov %s1414_s15  ;;  %s1675_s21 = smov %s1288_s22 }
 0x1df   : > { %s1676_s22 = smov %s1678_s9  ;;  %25 = sbr.rel (!%p23_p4) target bundleno = 12 (0xc), region = 113 }
 0x1e4   :  { %834 = vsyncpa [#allocation3], 1 }
 0x1e5   :  { %836 = vsyncpa [#allocation3 + $0x1], 1 }
 0x1e6   :  { %837 = vsyncpa [#allocation6], 1 }
 0x1e7   :  { %838 = vsyncpa [#allocation4], 1 }
 0x1e8   :  { %840 = vsyncpa [#allocation4 + $0x1], 1 }
 0x1e9   :  { %841 = vsyncpa [#allocation9], 1 }
 0x1ea   :  { %843 = vsyncpa [#allocation9 + $0x1], 1 }

</bundles_post_ra>
